<compile_context>
chip_gen: v5e
topology: v5e:2x2
jax: 0.10.0
libtpu: 0.0.40
codegen_flags: <defaults>
</compile_context>

<pallas_src>
import functools

import jax
import jax.numpy as jnp
from jax.experimental import pallas as pl
from jax.experimental.pallas import tpu as pltpu

LANE = 128          # TPU lane width
HIDDEN_PAD = 128    # 50 -> 128
CLASSES_PAD = 128   # 10 -> 128


def mlp_kernel(x_ref, w1_ref, b1_ref, w2_ref, b2_ref, out_ref):
    # Hidden layer: (Bt, 896)bf16 @ (896, 128)bf16 -> f32 acc, + bias, ReLU (f32 VPU).
    h = jnp.dot(x_ref[...], w1_ref[...], preferred_element_type=jnp.float32)
    h = jnp.maximum(h + b1_ref[...], 0.0)

    # Output layer: (Bt, 128)bf16 @ (128, 128)bf16 -> f32 acc, + bias.
    y = jnp.dot(h.astype(jnp.bfloat16), w2_ref[...],
                preferred_element_type=jnp.float32)
    out_ref[...] = (y + b2_ref[...]).astype(out_ref.dtype)   # lane-dense (.,128) store


def pad_params(w1, b1, w2, b2):
    """One-time host-side padding/casting of the (in,out)-layout weights."""
    K, H = w1.shape                      # (784, 50)
    N = w2.shape[1]                      # 10
    Kp = pl.cdiv(K, LANE) * LANE         # 896

    w1p = jnp.zeros((Kp, HIDDEN_PAD), jnp.float32).at[:K, :H].set(w1)
    b1p = jnp.zeros((1, HIDDEN_PAD), jnp.float32).at[:, :H].set(b1)
    w2p = jnp.zeros((HIDDEN_PAD, CLASSES_PAD), jnp.float32).at[:H, :N].set(w2)
    b2p = jnp.zeros((1, CLASSES_PAD), jnp.float32).at[:, :N].set(b2)

    return (w1p.astype(jnp.bfloat16), b1p,
            w2p.astype(jnp.bfloat16), b2p)


def nn_forward(x, w1p, b1p, w2p, b2p, num_classes):
    """x: (B, 784) f32.  Padded params from pad_params().  Returns (B, num_classes) f32."""
    B, K = x.shape
    Kp = w1p.shape[0]

    # Pad the reduction dim to a multiple of 128 and cast to bf16 (fused under jit).
    xp = jnp.pad(x, ((0, 0), (0, Kp - K))).astype(jnp.bfloat16)

    # Batch tiling: one block for small B, 256-row tiles (fills the 256x256 MXU on
    # v6e/v7x and shards across v7x's two TensorCores) for large B.
    bt = B if B <= 256 else 256
    grid = (pl.cdiv(B, bt),)

    out = pl.pallas_call(
        mlp_kernel,
        out_shape=jax.ShapeDtypeStruct((B, CLASSES_PAD), jnp.float32),
        grid=grid,
        in_specs=[
            pl.BlockSpec((bt, Kp), lambda i: (i, 0)),            # x tile
            pl.BlockSpec(w1p.shape, lambda i: (0, 0)),           # w1 (resident)
            pl.BlockSpec(b1p.shape, lambda i: (0, 0)),           # b1
            pl.BlockSpec(w2p.shape, lambda i: (0, 0)),           # w2
            pl.BlockSpec(b2p.shape, lambda i: (0, 0)),           # b2
        ],
        out_specs=pl.BlockSpec((bt, CLASSES_PAD), lambda i: (i, 0)),
        compiler_params=pltpu.CompilerParams(
            dimension_semantics=("parallel",)),
    )(xp, w1p, b1p, w2p, b2p)

    return out[:, :num_classes]


def init_params(key, input_size=784, hidden=50, num_classes=10):
    """Deterministic init mimicking PyTorch nn.Linear default (uniform +-1/sqrt(fan_in)).
    Weights stored as (in, out) = PyTorch weight.T so the kernel computes x @ W + b."""
    k1, k2, k3, k4 = jax.random.split(key, 4)
    lim1 = 1.0 / jnp.sqrt(jnp.float32(input_size))
    lim2 = 1.0 / jnp.sqrt(jnp.float32(hidden))
    w1 = jax.random.uniform(k1, (input_size, hidden), jnp.float32, -lim1, lim1)
    b1 = jax.random.uniform(k2, (1, hidden), jnp.float32, -lim1, lim1)
    w2 = jax.random.uniform(k3, (hidden, num_classes), jnp.float32, -lim2, lim2)
    b2 = jax.random.uniform(k4, (1, num_classes), jnp.float32, -lim2, lim2)
    return w1, b1, w2, b2


if __name__ == "__main__":
    input_size = 784
    hidden = 50
    num_classes = 10
    batch = 64

    key = jax.random.PRNGKey(0)
    kx, kp = jax.random.split(key)
    x = jax.random.normal(kx, (batch, input_size), jnp.float32)
    w1, b1, w2, b2 = init_params(kp, input_size, hidden, num_classes)

    # One-time padded/bf16 device-resident params; jit the whole forward so
    # x-padding/casting and the output slice fuse around the Pallas call.
    w1p, b1p, w2p, b2p = pad_params(w1, b1, w2, b2)
    fwd = jax.jit(functools.partial(nn_forward, num_classes=num_classes))

    out = fwd(x, w1p, b1p, w2p, b2p)
    jax.block_until_ready(out)
    assert out.shape == (batch, num_classes)

    # Reference 1: same math with matched bf16 input rounding, f32 accumulation.
    xb = x.astype(jnp.bfloat16).astype(jnp.float32)
    w1b = w1.astype(jnp.bfloat16).astype(jnp.float32)
    w2b = w2.astype(jnp.bfloat16).astype(jnp.float32)
    h_ref = jnp.maximum(xb @ w1b + b1, 0.0)
    ref_bf16 = h_ref.astype(jnp.bfloat16).astype(jnp.float32) @ w2b + b2
    assert jnp.allclose(out, ref_bf16, atol=1e-3, rtol=1e-3)

    # Reference 2: exact f32 PyTorch-equivalent forward (loose tol due to bf16 inputs).
    ref_f32 = jnp.maximum(x @ w1 + b1, 0.0) @ w2 + b2
    assert jnp.allclose(out, ref_f32, atol=5e-2, rtol=5e-2)

    print("KERNEL_OK")
</pallas_src>

<mosaic_0001>
module attributes {stable_mosaic.version = 11 : i64} {
  func.func @mlp_kernel(%arg0: i32, %arg1: memref<64x896xbf16, #tpu.memory_space<vmem>>, %arg2: memref<896x128xbf16, #tpu.memory_space<vmem>>, %arg3: memref<1x128xf32, #tpu.memory_space<vmem>>, %arg4: memref<128x128xbf16, #tpu.memory_space<vmem>>, %arg5: memref<1x128xf32, #tpu.memory_space<vmem>>, %arg6: memref<64x128xf32, #tpu.memory_space<vmem>>) attributes {dimension_semantics = [#tpu.dimension_semantics<parallel>], iteration_bounds = array<i64: 1>, scalar_prefetch = 0 : i64, scratch_operands = 0 : i64, tpu.core_type = #tpu.core_type<tc>, window_params = [{transform_indices = @transform_0, window_bounds = array<i64: 64, 896>}, {pipeline_mode = #tpu.pipeline_mode<synchronous>, transform_indices = @transform_1, window_bounds = array<i64: 896, 128>}, {pipeline_mode = #tpu.pipeline_mode<synchronous>, transform_indices = @transform_2, window_bounds = array<i64: 1, 128>}, {pipeline_mode = #tpu.pipeline_mode<synchronous>, transform_indices = @transform_3, window_bounds = array<i64: 128, 128>}, {pipeline_mode = #tpu.pipeline_mode<synchronous>, transform_indices = @transform_4, window_bounds = array<i64: 1, 128>}, {transform_indices = @transform_5, window_bounds = array<i64: 64, 128>}]} {
    %c0 = arith.constant 0 : index
    %c0_0 = arith.constant 0 : index
    %0 = vector.load %arg1[%c0, %c0_0] : memref<64x896xbf16, #tpu.memory_space<vmem>>, vector<64x896xbf16>
    %c0_1 = arith.constant 0 : index
    %c0_2 = arith.constant 0 : index
    %1 = vector.load %arg2[%c0_1, %c0_2] : memref<896x128xbf16, #tpu.memory_space<vmem>>, vector<896x128xbf16>
    %cst = arith.constant dense<0.000000e+00> : vector<64x128xf32>
    %2 = tpu.matmul %0, %1, %cst {dimension_numbers = #tpu.dot_dimension_numbers<[1], [0], [0], [1], [0, 0, 1, 1], [], []>} : vector<64x896xbf16>, vector<896x128xbf16>, vector<64x128xf32> -> vector<64x128xf32>
    %c0_3 = arith.constant 0 : index
    %c0_4 = arith.constant 0 : index
    %3 = vector.load %arg3[%c0_3, %c0_4] : memref<1x128xf32, #tpu.memory_space<vmem>>, vector<1x128xf32>
    %4 = vector.broadcast %3 : vector<1x128xf32> to vector<64x128xf32>
    %5 = arith.addf %2, %4 : vector<64x128xf32>
    %cst_5 = arith.constant 0.000000e+00 : f32
    %6 = vector.broadcast %cst_5 : f32 to vector<64x128xf32>
    %7 = arith.maximumf %5, %6 : vector<64x128xf32>
    %8 = arith.truncf %7 : vector<64x128xf32> to vector<64x128xbf16>
    %c0_6 = arith.constant 0 : index
    %c0_7 = arith.constant 0 : index
    %9 = vector.load %arg4[%c0_6, %c0_7] : memref<128x128xbf16, #tpu.memory_space<vmem>>, vector<128x128xbf16>
    %cst_8 = arith.constant dense<0.000000e+00> : vector<64x128xf32>
    %10 = tpu.matmul %8, %9, %cst_8 {dimension_numbers = #tpu.dot_dimension_numbers<[1], [0], [0], [1], [0, 0, 1, 1], [], []>} : vector<64x128xbf16>, vector<128x128xbf16>, vector<64x128xf32> -> vector<64x128xf32>
    %c0_9 = arith.constant 0 : index
    %c0_10 = arith.constant 0 : index
    %11 = vector.load %arg5[%c0_9, %c0_10] : memref<1x128xf32, #tpu.memory_space<vmem>>, vector<1x128xf32>
    %12 = vector.broadcast %11 : vector<1x128xf32> to vector<64x128xf32>
    %13 = arith.addf %10, %12 : vector<64x128xf32>
    %c0_11 = arith.constant 0 : index
    %c0_12 = arith.constant 0 : index
    %14 = vector.load %arg6[%c0_11, %c0_12] : memref<64x128xf32, #tpu.memory_space<vmem>>, vector<64x128xf32>
    tpu.vector_store %arg6[%c0_11, %c0_12], %13 {strides = array<i32>} : memref<64x128xf32, #tpu.memory_space<vmem>>, vector<64x128xf32>,
    return
  }
  func.func @transform_0(%arg0: i32) -> (i32, i32) {
    %c0_i32 = arith.constant 0 : i32
    %c0_i32_0 = arith.constant 0 : i32
    return %arg0, %c0_i32 : i32, i32
  }
  func.func @transform_1(%arg0: i32) -> (i32, i32) {
    %c0_i32 = arith.constant 0 : i32
    %c0_i32_0 = arith.constant 0 : i32
    %c0_i32_1 = arith.constant 0 : i32
    return %c0_i32, %c0_i32_0 : i32, i32
  }
  func.func @transform_2(%arg0: i32) -> (i32, i32) {
    %c0_i32 = arith.constant 0 : i32
    %c0_i32_0 = arith.constant 0 : i32
    %c0_i32_1 = arith.constant 0 : i32
    return %c0_i32, %c0_i32_0 : i32, i32
  }
  func.func @transform_3(%arg0: i32) -> (i32, i32) {
    %c0_i32 = arith.constant 0 : i32
    %c0_i32_0 = arith.constant 0 : i32
    %c0_i32_1 = arith.constant 0 : i32
    return %c0_i32, %c0_i32_0 : i32, i32
  }
  func.func @transform_4(%arg0: i32) -> (i32, i32) {
    %c0_i32 = arith.constant 0 : i32
    %c0_i32_0 = arith.constant 0 : i32
    %c0_i32_1 = arith.constant 0 : i32
    return %c0_i32, %c0_i32_0 : i32, i32
  }
  func.func @transform_5(%arg0: i32) -> (i32, i32) {
    %c0_i32 = arith.constant 0 : i32
    %c0_i32_0 = arith.constant 0 : i32
    return %arg0, %c0_i32 : i32, i32
  }
}

</mosaic_0001>

<bundles_post_ra>
// kernel: nn_forward.1
= control target key start
LH: loop header
LB: loop body
LE: loop exit
PB: predicated region body
PF: predicated region fallthrough
CT: control target
= control target key end

     0   :  { %s1879_s1 = inlined_call_operand.vmem [shape: bf16[896,128], index: 1, kind: input, shape index: {}]   ;;  %s1880_s2 = inlined_call_operand.vmem [shape: f32[1,128], index: 2, kind: input, shape index: {}]   ;;  %s1881_s0 = inlined_call_operand.vmem [shape: bf16[64,896], index: 0, kind: input, shape index: {}]   ;;  %s1882_s3 = inlined_call_operand.vmem [shape: bf16[128,128], index: 3, kind: input, shape index: {}]   ;;  %s1883_s4 = inlined_call_operand.vmem [shape: f32[1,128], index: 4, kind: input, shape index: {}]   ;;  %s1884_s5 = inlined_call_operand.vmem [shape: f32[64,128], index: 5, kind: output, shape index: {}]  }
   0x1   :  { %v1375_v0 = vld [vmem:[%s1879_s1 + $0x38] sm:$0xff]  ;;  %v1374_v4 = vld [vmem:[%s1879_s1 + $0x30] sm:$0xff]  ;;  %v1373_v8 = vld [vmem:[%s1879_s1 + $0x28] sm:$0xff] }
   0x2   :  { %v1383_v1 = vld [vmem:[%s1879_s1 + $0x78] sm:$0xff]  ;;  %648 = vmatpush.bf16.msra.mxu0 %v1375_v0  ;;  %v1382_v5 = vld [vmem:[%s1879_s1 + $0x70] sm:$0xff]  ;;  %v1381_v9 = vld [vmem:[%s1879_s1 + $0x68] sm:$0xff] }
   0x3   :  { %v1391_v2 = vld [vmem:[%s1879_s1 + $0xb8] sm:$0xff]  ;;  %677 = vmatpush.bf16.msra.mxu1 %v1383_v1  ;;  %v1390_v6 = vld [vmem:[%s1879_s1 + $0xb0] sm:$0xff]  ;;  %v1389_v10 = vld [vmem:[%s1879_s1 + $0xa8] sm:$0xff] }
   0x4   :  { %v1399_v3 = vld [vmem:[%s1879_s1 + $0xf8] sm:$0xff]  ;;  %706 = vmatpush.bf16.msra.mxu2 %v1391_v2  ;;  %v1398_v7 = vld [vmem:[%s1879_s1 + $0xf0] sm:$0xff]  ;;  %v1397_v11 = vld [vmem:[%s1879_s1 + $0xe8] sm:$0xff] }
   0x5   :  { %735 = vmatpush.bf16.msra.mxu3 %v1399_v3  ;;  %v1372_v12 = vld [vmem:[%s1879_s1 + $0x20] sm:$0xff]  ;;  %v1371_v16 = vld [vmem:[%s1879_s1 + $0x18] sm:$0xff]  ;;  %v1370_v20 = vld [vmem:[%s1879_s1 + $0x10] sm:$0xff] }
   0x6   :  { %649 = vmatpush.bf16.msra.mxu0 %v1374_v4  ;;  %v1380_v13 = vld [vmem:[%s1879_s1 + $0x60] sm:$0xff]  ;;  %v1379_v17 = vld [vmem:[%s1879_s1 + $0x58] sm:$0xff]  ;;  %v1378_v21 = vld [vmem:[%s1879_s1 + $0x50] sm:$0xff] }
   0x7   :  { %678 = vmatpush.bf16.msra.mxu1 %v1382_v5  ;;  %v1388_v14 = vld [vmem:[%s1879_s1 + $0xa0] sm:$0xff]  ;;  %v1387_v18 = vld [vmem:[%s1879_s1 + $0x98] sm:$0xff]  ;;  %v1386_v22 = vld [vmem:[%s1879_s1 + $0x90] sm:$0xff] }
   0x8   :  { %707 = vmatpush.bf16.msra.mxu2 %v1390_v6  ;;  %v1396_v15 = vld [vmem:[%s1879_s1 + $0xe0] sm:$0xff]  ;;  %v1395_v19 = vld [vmem:[%s1879_s1 + $0xd8] sm:$0xff]  ;;  %v1394_v23 = vld [vmem:[%s1879_s1 + $0xd0] sm:$0xff] }
   0x9   :  { %736 = vmatpush.bf16.msra.mxu3 %v1398_v7  ;;  %v1369_v24 = vld [vmem:[%s1879_s1 + $0x8] sm:$0xff]  ;;  %v1368_v28 = vld [vmem:[%s1879_s1] sm:$0xff]  ;;  %v1343_v33 = vld [vmem:[%s1881_s0 + $0x18] sm:$0xf0] }
   0xa   :  { %650 = vmatpush.bf16.msra.mxu0 %v1373_v8  ;;  %v1377_v25 = vld [vmem:[%s1879_s1 + $0x48] sm:$0xff]  ;;  %v1376_v29 = vld [vmem:[%s1879_s1 + $0x40] sm:$0xff]  ;;  %v1423_v40 = vld [vmem:[%s1879_s1 + $0x1b8] sm:$0xff] }
   0xb   :  { %679 = vmatpush.bf16.msra.mxu1 %v1381_v9  ;;  %v1385_v26 = vld [vmem:[%s1879_s1 + $0x88] sm:$0xff]  ;;  %v1384_v30 = vld [vmem:[%s1879_s1 + $0x80] sm:$0xff]  ;;  %v1407_v41 = vld [vmem:[%s1879_s1 + $0x138] sm:$0xff] }
   0xc   :  { %708 = vmatpush.bf16.msra.mxu2 %v1389_v10  ;;  %v1393_v27 = vld [vmem:[%s1879_s1 + $0xc8] sm:$0xff]  ;;  %v1392_v31 = vld [vmem:[%s1879_s1 + $0xc0] sm:$0xff]  ;;  %v1415_v46 = vld [vmem:[%s1879_s1 + $0x178] sm:$0xff] }
   0xd   :  { %737 = vmatpush.bf16.msra.mxu3 %v1397_v11  ;;  %v974_v32 = vld [vmem:[%s1881_s0] sm:$0xf]  ;;  %v1340_v34 = vld [vmem:[%s1881_s0 + $0x4] sm:$0xf]  ;;  %v982_v36 = vld [vmem:[%s1881_s0 + $0x8] sm:$0xf] }
   0xe   :  { %651 = vmatpush.bf16.msra.mxu0 %v1372_v12  ;;  %v976_v35 = vld [vmem:[%s1881_s0 + $0x1c] sm:$0xf0]  ;;  %v1344_v37 = vld [vmem:[%s1881_s0 + $0x20] sm:$0xf0]  ;;  %v1341_v38 = vld [vmem:[%s1881_s0 + $0xc] sm:$0xf]  ;;  %v975_v42 = vor.u32 %v1343_v33, %v974_v32 }
   0xf   :  { %680 = vmatpush.bf16.msra.mxu1 %v1380_v13  ;;  %v984_v39 = vld [vmem:[%s1881_s0 + $0x24] sm:$0xf0]  ;;  %v979_v43 = vor.u32 %v1340_v34, %v976_v35  ;;  %v983_v44 = vor.u32 %v1344_v37, %v982_v36  ;;  %v1422_v47 = vld [vmem:[%s1879_s1 + $0x1b0] sm:$0xff]  ;;  %v1420_v53 = vld [vmem:[%s1879_s1 + $0x1a0] sm:$0xff] }
  0x10   :  { %709 = vmatpush.bf16.msra.mxu2 %v1388_v14  ;;  %v987_v45 = vor.u32 %v1341_v38, %v984_v39  ;;  %v1406_v48 = vld [vmem:[%s1879_s1 + $0x130] sm:$0xff]  ;;  %v1421_v50 = vld [vmem:[%s1879_s1 + $0x1a8] sm:$0xff]  ;;  %v1404_v54 = vld [vmem:[%s1879_s1 + $0x120] sm:$0xff] }
  0x11   :  { %738 = vmatpush.bf16.msra.mxu3 %v1396_v15  ;;  %v1414_v49 = vld [vmem:[%s1879_s1 + $0x170] sm:$0xff]  ;;  %v1405_v51 = vld [vmem:[%s1879_s1 + $0x128] sm:$0xff]  ;;  %v1002_v55 = vld [vmem:[%s1881_s0 + $0x38] sm:$0xf] }
  0x12   :  { %652 = vmatpush.bf16.msra.mxu0 %v1371_v16  ;;  %v1413_v52 = vld [vmem:[%s1879_s1 + $0x168] sm:$0xff]  ;;  %v1350_v56 = vld [vmem:[%s1881_s0 + $0x50] sm:$0xf0]  ;;  %v1347_v57 = vld [vmem:[%s1881_s0 + $0x3c] sm:$0xf] }
  0x13   :  { %681 = vmatpush.bf16.msra.mxu1 %v1379_v17  ;;  %v1004_v58 = vld [vmem:[%s1881_s0 + $0x54] sm:$0xf0]  ;;  %v1010_v59 = vld [vmem:[%s1881_s0 + $0x40] sm:$0xf]  ;;  %v1351_v60 = vld [vmem:[%s1881_s0 + $0x58] sm:$0xf0]  ;;  %v1003_v2 = vor.u32 %v1350_v56, %v1002_v55 }
  0x14   :  { %710 = vmatpush.bf16.msra.mxu2 %v1387_v18  ;;  %v1348_v61 = vld [vmem:[%s1881_s0 + $0x44] sm:$0xf]  ;;  %v1012_v62 = vld [vmem:[%s1881_s0 + $0x5c] sm:$0xf0]  ;;  %v1419_v0 = vld [vmem:[%s1879_s1 + $0x198] sm:$0xff]  ;;  %v1007_v3 = vor.u32 %v1347_v57, %v1004_v58  ;;  %v1011_v4 = vor.u32 %v1351_v60, %v1010_v59 }
  0x15   :  { %739 = vmatpush.bf16.msra.mxu3 %v1395_v19  ;;  %v1412_v63 = vld [vmem:[%s1879_s1 + $0x160] sm:$0xff]  ;;  %v1403_v1 = vld [vmem:[%s1879_s1 + $0x118] sm:$0xff]  ;;  %v1015_v5 = vor.u32 %v1348_v61, %v1012_v62  ;;  %v1418_v7 = vld [vmem:[%s1879_s1 + $0x190] sm:$0xff] }
  0x16   :  { %653 = vmatpush.bf16.msra.mxu0 %v1370_v20  ;;  %v1411_v6 = vld [vmem:[%s1879_s1 + $0x158] sm:$0xff]  ;;  %v1402_v8 = vld [vmem:[%s1879_s1 + $0x110] sm:$0xff]  ;;  %v1417_v10 = vld [vmem:[%s1879_s1 + $0x188] sm:$0xff] }
  0x17   :  { %682 = vmatpush.bf16.msra.mxu1 %v1378_v21  ;;  %v1410_v9 = vld [vmem:[%s1879_s1 + $0x150] sm:$0xff]  ;;  %v1401_v11 = vld [vmem:[%s1879_s1 + $0x108] sm:$0xff]  ;;  %v1416_v13 = vld [vmem:[%s1879_s1 + $0x180] sm:$0xff] }
  0x18   :  { %711 = vmatpush.bf16.msra.mxu2 %v1386_v22  ;;  %v1409_v12 = vld [vmem:[%s1879_s1 + $0x148] sm:$0xff]  ;;  %v1400_v14 = vld [vmem:[%s1879_s1 + $0x100] sm:$0xff]  ;;  %v1030_v15 = vld [vmem:[%s1881_s0 + $0x70] sm:$0xf] }
  0x19   :  { %740 = vmatpush.bf16.msra.mxu3 %v1394_v23  ;;  %v1357_v16 = vld [vmem:[%s1881_s0 + $0x88] sm:$0xf0]  ;;  %v1354_v17 = vld [vmem:[%s1881_s0 + $0x74] sm:$0xf]  ;;  %v1032_v18 = vld [vmem:[%s1881_s0 + $0x8c] sm:$0xf0] }
  0x1a   :  { %654 = vmatpush.bf16.msra.mxu0 %v1369_v24  ;;  %v1038_v19 = vld [vmem:[%s1881_s0 + $0x78] sm:$0xf]  ;;  %v1358_v20 = vld [vmem:[%s1881_s0 + $0x90] sm:$0xf0]  ;;  %v1355_v21 = vld [vmem:[%s1881_s0 + $0x7c] sm:$0xf]  ;;  %v1031_v24 = vor.u32 %v1357_v16, %v1030_v15 }
  0x1b   :  { %683 = vmatpush.bf16.msra.mxu1 %v1377_v25  ;;  %v1040_v22 = vld [vmem:[%s1881_s0 + $0x94] sm:$0xf0]  ;;  %v1408_v23 = vld [vmem:[%s1879_s1 + $0x140] sm:$0xff]  ;;  %v1035_v25 = vor.u32 %v1354_v17, %v1032_v18  ;;  %v1066_v32 = vld [vmem:[%s1881_s0 + $0xb0] sm:$0xf] }
  0x1c   :  { %712 = vmatpush.bf16.msra.mxu2 %v1385_v26  ;;  %v1039_v26 = vor.u32 %v1358_v20, %v1038_v19  ;;  %v1365_v33 = vld [vmem:[%s1881_s0 + $0xc8] sm:$0xf0]  ;;  %v1362_v34 = vld [vmem:[%s1881_s0 + $0xb4] sm:$0xf]  ;;  %v1068_v35 = vld [vmem:[%s1881_s0 + $0xcc] sm:$0xf0] }
  0x1d   :  { %741 = vmatpush.bf16.msra.mxu3 %v1393_v27  ;;  %v1043_v27 = vor.u32 %v1355_v21, %v1040_v22  ;;  %v1067_v38 = vor.u32 %v1365_v33, %v1066_v32  ;;  %v1071_v39 = vor.u32 %v1362_v34, %v1068_v35  ;;  %v1046_v58 = vld [vmem:[%s1881_s0 + $0x80] sm:$0xf]  ;;  %v1359_v59 = vld [vmem:[%s1881_s0 + $0x98] sm:$0xf0]  ;;  %v1356_v60 = vld [vmem:[%s1881_s0 + $0x84] sm:$0xf] }
  0x1e   :  { %655 = vmatpush.bf16.msra.mxu0 %v1368_v28  ;;  %v1058_v28 = vld [vmem:[%s1881_s0 + $0xa8] sm:$0xf]  ;;  %v1048_v61 = vld [vmem:[%s1881_s0 + $0x9c] sm:$0xf0]  ;;  %v1426_v35 = vld [vmem:[%s1882_s3 + $0x10] sm:$0xff] }
  0x1f   :  { %684 = vmatpush.bf16.msra.mxu1 %v1376_v29  ;;  %v1364_v29 = vld [vmem:[%s1881_s0 + $0xc0] sm:$0xf0]  ;;  %v1054_v62 = vld [vmem:[%s1881_s0 + $0x88] sm:$0xf] }
  0x20   :  { %713 = vmatpush.bf16.msra.mxu2 %v1384_v30  ;;  %v1361_v30 = vld [vmem:[%s1881_s0 + $0xac] sm:$0xf]  ;;  %v1059_v36 = vor.u32 %v1364_v29, %v1058_v28 }
  0x21   :  { %742 = vmatpush.bf16.msra.mxu3 %v1392_v31  ;;  %656 = vmatmul.bf16.vlgmr.msra.gmra.mxu0 %v975_v42  ;;  %v1060_v31 = vld [vmem:[%s1881_s0 + $0xc4] sm:$0xf0]  ;;  %v1342_v42 = vld [vmem:[%s1881_s0 + $0x14] sm:$0xf] }
  0x22   :  { %764 = vmatpush.bf16.msrb.mxu0 %v1407_v41  ;;  %685 = vmatmul.bf16.vlgmr.msra.gmra.mxu1 %v979_v43  ;;  %v1063_v37 = vor.u32 %v1361_v30, %v1060_v31  ;;  %v1345_v41 = vld [vmem:[%s1881_s0 + $0x28] sm:$0xf0]  ;;  %v992_v43 = vld [vmem:[%s1881_s0 + $0x2c] sm:$0xf0]  ;;  %v1427_v30 = vld [vmem:[%s1882_s3 + $0x18] sm:$0xff] }
  0x23   :  { %714 = vmatmul.bf16.vlgmr.msra.gmra.mxu2 %v983_v44  ;;  %793 = vmatpush.bf16.msrb.mxu1 %v1415_v46  ;;  %v998_v44 = vld [vmem:[%s1881_s0 + $0x18] sm:$0xf]  ;;  %v1429_v19 = vld [vmem:[%s1882_s3 + $0x28] sm:$0xff] }
  0x24   :  { %822 = vmatpush.bf16.msrb.mxu2 %v1423_v40  ;;  %743 = vmatmul.bf16.vlgmr.msra.gmra.mxu3 %v987_v45  ;;  %v990_v40 = vld [vmem:[%s1881_s0 + $0x10] sm:$0xf]  ;;  %v1346_v45 = vld [vmem:[%s1881_s0 + $0x30] sm:$0xf0] }
  0x25   :  { %v991_v46 = vor.u32 %v1345_v41, %v990_v40  ;;  %v1425_v41 = vld [vmem:[%s1882_s3 + $0x8] sm:$0xff] }
  0x26   :  { %765 = vmatpush.bf16.msrb.mxu0 %v1406_v48  ;;  %v999_v48 = vor.u32 %v1346_v45, %v998_v44 }
  0x27   :  { %794 = vmatpush.bf16.msrb.mxu1 %v1414_v49  ;;  %v1018_v49 = vld [vmem:[%s1881_s0 + $0x48] sm:$0xf] }
  0x28   :  { %823 = vmatpush.bf16.msrb.mxu2 %v1422_v47  ;;  %v995_v47 = vor.u32 %v1342_v42, %v992_v43 }
  0x2a   :  { %766 = vmatpush.bf16.msrb.mxu0 %v1405_v51  ;;  %v1349_v51 = vld [vmem:[%s1881_s0 + $0x4c] sm:$0xf] }
  0x2b   :  { %795 = vmatpush.bf16.msrb.mxu1 %v1413_v52  ;;  %v1020_v52 = vld [vmem:[%s1881_s0 + $0x64] sm:$0xf0] }
  0x2c   :  { %824 = vmatpush.bf16.msrb.mxu2 %v1421_v50  ;;  %v1352_v50 = vld [vmem:[%s1881_s0 + $0x60] sm:$0xf0]  ;;  %v1023_v56 = vor.u32 %v1349_v51, %v1020_v52 }
  0x2d   :  { %v1019_v55 = vor.u32 %v1352_v50, %v1018_v49 }
  0x2e   :  { %767 = vmatpush.bf16.msrb.mxu0 %v1404_v54  ;;  %v1353_v54 = vld [vmem:[%s1881_s0 + $0x68] sm:$0xf0] }
  0x2f   :  { %796 = vmatpush.bf16.msrb.mxu1 %v1412_v63  ;;  %v1360_v63 = vld [vmem:[%s1881_s0 + $0xa0] sm:$0xf0] }
  0x30   :  { %825 = vmatpush.bf16.msrb.mxu2 %v1420_v53  ;;  %v1026_v53 = vld [vmem:[%s1881_s0 + $0x50] sm:$0xf] }
  0x31   :  { %661 = vmatmul.bf16.gmra.mxu0 %v1003_v2  ;;  %v1027_v57 = vor.u32 %v1353_v54, %v1026_v53  ;;  %v1055_v2 = vor.u32 %v1360_v63, %v1054_v62 }
  0x32   :  { %768 = vmatpush.bf16.msrb.mxu0 %v1403_v1  ;;  %690 = vmatmul.bf16.gmra.mxu1 %v1007_v3  ;;  %v1051_v1 = vor.u32 %v1356_v60, %v1048_v61  ;;  %v1074_v3 = vld [vmem:[%s1881_s0 + $0xb8] sm:$0xf] }
  0x33   :  { %719 = vmatmul.bf16.gmra.mxu2 %v1011_v4  ;;  %797 = vmatpush.bf16.msrb.mxu1 %v1411_v6  ;;  %v1366_v4 = vld [vmem:[%s1881_s0 + $0xd0] sm:$0xf0]  ;;  %v1076_v6 = vld [vmem:[%s1881_s0 + $0xd4] sm:$0xf0] }
  0x34   :  { %826 = vmatpush.bf16.msrb.mxu2 %v1419_v0  ;;  %748 = vmatmul.bf16.gmra.mxu3 %v1015_v5  ;;  %v1047_v0 = vor.u32 %v1359_v59, %v1046_v58  ;;  %v1363_v5 = vld [vmem:[%s1881_s0 + $0xbc] sm:$0xf] }
  0x36   :  { %769 = vmatpush.bf16.msrb.mxu0 %v1402_v8  ;;  %v1367_v8 = vld [vmem:[%s1881_s0 + $0xd8] sm:$0xf0] }
  0x37   :  { %798 = vmatpush.bf16.msrb.mxu1 %v1410_v9  ;;  %v1075_v9 = vor.u32 %v1366_v4, %v1074_v3 }
  0x38   :  { %827 = vmatpush.bf16.msrb.mxu2 %v1418_v7  ;;  %v1082_v7 = vld [vmem:[%s1881_s0 + $0xc0] sm:$0xf] }
  0x3a   :  { %770 = vmatpush.bf16.msrb.mxu0 %v1401_v11  ;;  %v1083_v11 = vor.u32 %v1367_v8, %v1082_v7 }
  0x3b   :  { %799 = vmatpush.bf16.msrb.mxu1 %v1409_v12  ;;  %v1431_v12 = vld [vmem:[%s1882_s3 + $0x38] sm:$0xff] }
  0x3c   :  { %828 = vmatpush.bf16.msrb.mxu2 %v1417_v10  ;;  %v1079_v10 = vor.u32 %v1363_v5, %v1076_v6  ;;  %931 = vmatpush.bf16.msrb.mxu3 %v1431_v12 }
  0x3e   :  { %771 = vmatpush.bf16.msrb.mxu0 %v1400_v14  ;;  %v1809_v14 = vld [vmem:[%s1880_s2] ss:$0 sm:$0xff] }
  0x3f   :  { %800 = vmatpush.bf16.msrb.mxu1 %v1408_v23 }
  0x40   :  { %829 = vmatpush.bf16.msrb.mxu2 %v1416_v13  ;;  %v1430_v13 = vld [vmem:[%s1882_s3 + $0x30] sm:$0xff] }
  0x41   :  { %666 = vmatmul.bf16.gmra.mxu0 %v1031_v24  ;;  %932 = vmatpush.bf16.msrb.mxu3 %v1430_v13  ;;  %v1428_v24 = vld [vmem:[%s1882_s3 + $0x20] sm:$0xff] }
  0x42   :  { %695 = vmatmul.bf16.gmra.mxu1 %v1035_v25 }
  0x43   :  { %724 = vmatmul.bf16.gmra.mxu2 %v1039_v26 }
  0x44   :  { %753 = vmatmul.bf16.gmra.mxu3 %v1043_v27 }
  0x45   :  { %933 = vmatpush.bf16.msrb.mxu3 %v1429_v19 }
  0x49   :  { %934 = vmatpush.bf16.msrb.mxu3 %v1428_v24 }
  0x4d   :  { %935 = vmatpush.bf16.msrb.mxu3 %v1427_v30 }
  0x51   :  { %671 = vmatmul.bf16.gmra.mxu0 %v1059_v36  ;;  %936 = vmatpush.bf16.msrb.mxu3 %v1426_v35 }
  0x52   :  { %700 = vmatmul.bf16.gmra.mxu1 %v1063_v37 }
  0x53   :  { %729 = vmatmul.bf16.gmra.mxu2 %v1067_v38 }
  0x54   :  { %758 = vmatmul.bf16.gmra.mxu3 %v1071_v39 }
  0x55   :  { %937 = vmatpush.bf16.msrb.mxu3 %v1425_v41 }
  0x61   :  { %772 = vmatmul.bf16.vlgmr.msrb.gmra.mxu0 %v991_v46  ;;  %v1424_v46 = vld [vmem:[%s1882_s3] sm:$0xff] }
  0x62   :  { %801 = vmatmul.bf16.vlgmr.msrb.gmra.mxu1 %v995_v47  ;;  %938 = vmatpush.bf16.msrb.mxu3 %v1424_v46 }
  0x63   :  { %830 = vmatmul.bf16.vlgmr.msrb.gmra.mxu2 %v999_v48 }
  0x71   :  { %777 = vmatmul.bf16.gmra.mxu0 %v1019_v55 }
  0x72   :  { %806 = vmatmul.bf16.gmra.mxu1 %v1023_v56 }
  0x73   :  { %835 = vmatmul.bf16.gmra.mxu2 %v1027_v57 }
  0x81   :  { %782 = vmatmul.bf16.gmra.mxu0 %v1047_v0 }
  0x82   :  { %811 = vmatmul.bf16.gmra.mxu1 %v1051_v1 }
  0x83   :  { %840 = vmatmul.bf16.gmra.mxu2 %v1055_v2 }
  0x91   :  { %787 = vmatmul.bf16.gmra.mxu0 %v1075_v9 }
  0x92   :  { %816 = vmatmul.bf16.gmra.mxu1 %v1079_v10 }
  0x93   :  { %845 = vmatmul.bf16.gmra.mxu2 %v1083_v11 }
  0x9e   :  { %v657_v15 = vpop.f32.mrf.mxu0 }
  0x9f   :  { %v686_v16 = vpop.f32.mrf.mxu1  ;;  %v658_v17 = vadd.f32 %v1809_v14, %v657_v15 }
  0xa1   :  { %v687_v18 = vadd.f32 %v686_v16, %v658_v17 }
  0xa6   :  { %v715_v20 = vpop.f32.mrf.mxu2  ;;  %v659_v22 = vpop.f32.mrf.mxu0 }
  0xa7   :  { %v716_v21 = vadd.f32 %v715_v20, %v687_v18  ;;  %v688_v23 = vpop.f32.mrf.mxu1  ;;  %v744_v47 = vpop.f32.mrf.mxu3  ;;  %v660_v58 = vadd.f32 %v1809_v14, %v659_v22 }
  0xa9   :  { %v689_v62 = vadd.f32 %v688_v23, %v660_v58  ;;  %v745_v1 = vadd.f32 %v744_v47, %v716_v21 }
  0xae   :  { %v717_v25 = vpop.f32.mrf.mxu2  ;;  %v662_v26 = vpop.f32.mrf.mxu0 }
  0xaf   :  { %v691_v27 = vpop.f32.mrf.mxu1  ;;  %v663_v28 = vadd.f32 %v1809_v14, %v662_v26  ;;  %v746_v57 = vpop.f32.mrf.mxu3  ;;  %v718_v0 = vadd.f32 %v717_v25, %v689_v62 }
  0xb1   :  { %v692_v29 = vadd.f32 %v691_v27, %v663_v28  ;;  %v747_v3 = vadd.f32 %v746_v57, %v718_v0 }
  0xb6   :  { %v720_v31 = vpop.f32.mrf.mxu2  ;;  %v664_v33 = vpop.f32.mrf.mxu0 }
  0xb7   :  { %v721_v32 = vadd.f32 %v720_v31, %v692_v29  ;;  %v693_v34 = vpop.f32.mrf.mxu1  ;;  %v749_v63 = vpop.f32.mrf.mxu3  ;;  %v665_v10 = vadd.f32 %v1809_v14, %v664_v33 }
  0xb9   :  { %v694_v18 = vadd.f32 %v693_v34, %v665_v10  ;;  %v750_v23 = vadd.f32 %v749_v63, %v721_v32 }
  0xbe   :  { %v722_v36 = vpop.f32.mrf.mxu2  ;;  %v667_v37 = vpop.f32.mrf.mxu0 }
  0xbf   :  { %v696_v38 = vpop.f32.mrf.mxu1  ;;  %v668_v39 = vadd.f32 %v1809_v14, %v667_v37  ;;  %v751_v9 = vpop.f32.mrf.mxu3  ;;  %v723_v21 = vadd.f32 %v722_v36, %v694_v18 }
  0xc1   :  { %v697_v40 = vadd.f32 %v696_v38, %v668_v39  ;;  %v752_v26 = vadd.f32 %v751_v9, %v723_v21 }
  0xc6   :  { %v725_v42 = vpop.f32.mrf.mxu2  ;;  %v669_v44 = vpop.f32.mrf.mxu0 }
  0xc7   :  { %v1829_v43 = vadd.f32 %v725_v42, %v697_v40  ;;  %v698_v45 = vpop.f32.mrf.mxu1  ;;  %v754_v24 = vpop.f32.mrf.mxu3  ;;  %v670_v33 = vadd.f32 %v1809_v14, %v669_v44 }
  0xc9   :  { %v699_v41 = vadd.f32 %v698_v45, %v670_v33 }
  0xce   :  { %v727_v48 = vpop.f32.mrf.mxu2  ;;  %v672_v49 = vpop.f32.mrf.mxu0 }
  0xcf   :  { %v701_v50 = vpop.f32.mrf.mxu1  ;;  %v673_v51 = vadd.f32 %v1809_v14, %v672_v49  ;;  %v756_v36 = vpop.f32.mrf.mxu3  ;;  %v728_v46 = vadd.f32 %v727_v48, %v699_v41  ;;  %v755_v49 = vadd.f32 %v754_v24, %v1829_v43 }
  0xd1   :  { %v702_v52 = vadd.f32 %v701_v50, %v673_v51  ;;  %v757_v51 = vadd.f32 %v756_v36, %v728_v46 }
  0xd6   :  { %v730_v53 = vpop.f32.mrf.mxu2  ;;  %v1837_v55 = vpop.f32.mrf.mxu0 }
  0xd7   :  { %v1835_v54 = vadd.f32 %v730_v53, %v702_v52  ;;  %v1839_v56 = vpop.f32.mrf.mxu1  ;;  %v759_v58 = vpop.f32.mrf.mxu3 }
  0xde   :  { %v1842_v59 = vpop.f32.mrf.mxu2  ;;  %v773_v60 = vpop.f32.mrf.mxu0 }
  0xdf   :  { %v802_v61 = vpop.f32.mrf.mxu1  ;;  %v774_v4 = vadd.f32 %v773_v60, %v745_v1 }
  0xe1   :  { %v803_v8 = vadd.f32 %v802_v61, %v774_v4  ;;  %v675_v61 = vadd.f32 %v1809_v14, %v1837_v55 }
  0xe3   :  { %v704_v1 = vadd.f32 %v1839_v56, %v675_v61 }
  0xe5   :  { %v733_v4 = vadd.f32 %v1842_v59, %v704_v1 }
  0xe6   :  { %v831_v2 = vpop.f32.mrf.mxu2  ;;  %v775_v5 = vpop.f32.mrf.mxu0 }
  0xe7   :  { %v804_v6 = vpop.f32.mrf.mxu1  ;;  %v776_v7 = vadd.f32 %v775_v5, %v747_v3  ;;  %v832_v11 = vadd.f32 %v831_v2, %v803_v8 }
  0xe9   :  { %v805_v12 = vadd.f32 %v804_v6, %v776_v7  ;;  %v851_v19 = vmax.f32 %v832_v11, 0.0  ;;  %v761_v6 = vpop.f32.mrf.mxu3  ;;  %v760_v7 = vadd.f32 %v759_v58, %v1835_v54  ;;  %v1433_v54 = vld [vmem:[%s1883_s4] ss:$0 sm:$0xff] }
  0xea   :  { %v762_v9 = vadd.f32 %v761_v6, %v733_v4 }
  0xee   :  { %v833_v13 = vpop.f32.mrf.mxu2  ;;  %v778_v16 = vpop.f32.mrf.mxu0 }
  0xef   :  { %v834_v15 = vadd.f32 %v833_v13, %v805_v12  ;;  %v807_v17 = vpop.f32.mrf.mxu1  ;;  %v779_v27 = vadd.f32 %v778_v16, %v750_v23 }
  0xf1   :  { %v852_v20 = vmax.f32 %v834_v15, 0.0  ;;  %v808_v31 = vadd.f32 %v807_v17, %v779_v27 }
  0xf3   :  { %v859_v22 = vpack.c.bf16 %v852_v20, %v851_v19 }
  0xf5   :  { %939 = vmatmul.bf16.vlgmr.msrb.gmra.mxu3 %v859_v22 }
  0xf6   :  { %v836_v25 = vpop.f32.mrf.mxu2  ;;  %v780_v28 = vpop.f32.mrf.mxu0 }
  0xf7   :  { %v809_v29 = vpop.f32.mrf.mxu1  ;;  %v781_v30 = vadd.f32 %v780_v28, %v752_v26  ;;  %v837_v35 = vadd.f32 %v836_v25, %v808_v31 }
  0xf9   :  { %v810_v37 = vadd.f32 %v809_v29, %v781_v30  ;;  %v853_v32 = vmax.f32 %v837_v35, 0.0 }
  0xfe   :  { %v838_v38 = vpop.f32.mrf.mxu2  ;;  %v783_v39 = vpop.f32.mrf.mxu0 }
  0xff   :  { %v839_v34 = vadd.f32 %v838_v38, %v810_v37  ;;  %v812_v40 = vpop.f32.mrf.mxu1  ;;  %v784_v52 = vadd.f32 %v783_v39, %v755_v49 }
 0x101   :  { %v854_v42 = vmax.f32 %v839_v34, 0.0  ;;  %v813_v60 = vadd.f32 %v812_v40, %v784_v52 }
 0x103   :  { %v860_v47 = vpack.c.bf16 %v854_v42, %v853_v32 }
 0x105   :  { %944 = vmatmul.bf16.gmra.mxu3 %v860_v47 }
 0x106   :  { %v841_v50 = vpop.f32.mrf.mxu2  ;;  %v785_v53 = vpop.f32.mrf.mxu0 }
 0x107   :  { %v814_v44 = vpop.f32.mrf.mxu1  ;;  %v786_v57 = vadd.f32 %v785_v53, %v757_v51  ;;  %v842_v62 = vadd.f32 %v841_v50, %v813_v60 }
 0x109   :  { %v815_v45 = vadd.f32 %v814_v44, %v786_v57  ;;  %v855_v43 = vmax.f32 %v842_v62, 0.0 }
 0x10e   :  { %v843_v63 = vpop.f32.mrf.mxu2  ;;  %v788_v48 = vpop.f32.mrf.mxu0 }
 0x10f   :  { %v844_v0 = vadd.f32 %v843_v63, %v815_v45  ;;  %v817_v3 = vpop.f32.mrf.mxu1  ;;  %v789_v14 = vadd.f32 %v788_v48, %v760_v7 }
 0x111   :  { %v856_v2 = vmax.f32 %v844_v0, 0.0  ;;  %v818_v11 = vadd.f32 %v817_v3, %v789_v14 }
 0x113   :  { %v861_v5 = vpack.c.bf16 %v856_v2, %v855_v43 }
 0x115   :  { %949 = vmatmul.bf16.gmra.mxu3 %v861_v5 }
 0x116   :  { %v846_v8 = vpop.f32.mrf.mxu2  ;;  %v790_v55 = vpop.f32.mrf.mxu0 }
 0x117   :  { %v791_v10 = vadd.f32 %v790_v55, %v762_v9  ;;  %v819_v12 = vpop.f32.mrf.mxu1  ;;  %v847_v13 = vadd.f32 %v846_v8, %v818_v11 }
 0x119   :  { %v820_v15 = vadd.f32 %v819_v12, %v791_v10  ;;  %v857_v17 = vmax.f32 %v847_v13, 0.0 }
 0x11e   :  { %v848_v56 = vpop.f32.mrf.mxu2 }
 0x11f   :  { %v849_v16 = vadd.f32 %v848_v56, %v820_v15 }
 0x121   :  { %v858_v18 = vmax.f32 %v849_v16, 0.0 }
 0x123   :  { %v862_v19 = vpack.c.bf16 %v858_v18, %v857_v17 }
 0x125   :  { %954 = vmatmul.bf16.gmra.mxu3 %v862_v19 }
 0x178   :  { %v940_v59 = vpop.f32.mrf.mxu3 }
 0x179   :  { %v941_v20 = vadd.f32 %v1433_v54, %v940_v59 }
 0x17b   :  { %960 = vst [vmem:[%s1884_s5] sm:$0xff] %v941_v20 }
 0x180   :  { %v942_v21 = vpop.f32.mrf.mxu3 }
 0x181   :  { %v943_v22 = vadd.f32 %v1433_v54, %v942_v21 }
 0x183   :  { %961 = vst [vmem:[%s1884_s5 + $0x8] sm:$0xff] %v943_v22 }
 0x188   :  { %v945_v23 = vpop.f32.mrf.mxu3 }
 0x189   :  { %v946_v24 = vadd.f32 %v1433_v54, %v945_v23 }
 0x18b   :  { %962 = vst [vmem:[%s1884_s5 + $0x10] sm:$0xff] %v946_v24 }
 0x190   :  { %v947_v25 = vpop.f32.mrf.mxu3 }
 0x191   :  { %v948_v26 = vadd.f32 %v1433_v54, %v947_v25 }
 0x193   :  { %963 = vst [vmem:[%s1884_s5 + $0x18] sm:$0xff] %v948_v26 }
 0x198   :  { %v950_v27 = vpop.f32.mrf.mxu3 }
 0x199   :  { %v951_v28 = vadd.f32 %v1433_v54, %v950_v27 }
 0x19b   :  { %964 = vst [vmem:[%s1884_s5 + $0x20] sm:$0xff] %v951_v28 }
 0x1a0   :  { %v952_v29 = vpop.f32.mrf.mxu3 }
 0x1a1   :  { %v953_v30 = vadd.f32 %v1433_v54, %v952_v29 }
 0x1a3   :  { %965 = vst [vmem:[%s1884_s5 + $0x28] sm:$0xff] %v953_v30 }
 0x1a8   :  { %v955_v31 = vpop.f32.mrf.mxu3 }
 0x1a9   :  { %v956_v33 = vadd.f32 %v1433_v54, %v955_v31 }
 0x1ab   :  { %966 = vst [vmem:[%s1884_s5 + $0x30] sm:$0xff] %v956_v33 }
 0x1b0   :  { %v957_v35 = vpop.f32.mrf.mxu3 }
 0x1b1   :  { %v958_v37 = vadd.f32 %v1433_v54, %v957_v35 }
 0x1b3   :  { %967 = vst [vmem:[%s1884_s5 + $0x38] sm:$0xff] %v958_v37 }

</bundles_post_ra>
